<compile_context>
chip_gen: v7x
topology: tpu7x:2x2x1
jax: 0.10.0
libtpu: 0.0.40
codegen_flags: <defaults>
</compile_context>

<pallas_src>
import jax
import jax.numpy as jnp
from jax.experimental import pallas as pl
from jax.experimental.pallas import tpu as pltpu


# ---------------------------------------------------------------------------
# Fused kernel: inner model + CFG combine, one grid step per sample
# ---------------------------------------------------------------------------
def _kcfg_fused_kernel(sigma_ref, scale_ref, x_ref, wct_ref, b_ref,
                       ceu_ref, cec_ref, o_ref):
    """One grid step == one sample.

    sigma_ref : (B,)  f32 SMEM (scalar prefetch)
    scale_ref : (1,)  f32 SMEM (scalar prefetch)
    x_ref     : (1, C, HW) VMEM — NCHW image with spatial flattened onto lanes
    wct_ref   : (C, C)     VMEM — transposed 1x1-conv weight, wct[d, c] = wc[c, d]
    b_ref     : (C, 1)     VMEM — per-channel bias (scaled by sigma in-kernel)
    ceu_ref   : (1, C, 1)  VMEM — uncond conditioning embedding for this sample
    cec_ref   : (1, C, 1)  VMEM — cond conditioning embedding for this sample
    o_ref     : (1, C, HW) VMEM — lane-dense output tile
    """
    i = pl.program_id(0)
    sig = sigma_ref[i]                                     # scalar f32 (SMEM)
    scale = scale_ref[0]                                   # scalar f32 (SMEM)

    x = x_ref[0]                                           # (C, HW)
    C = x.shape[0]

    # karras-style c_in = 1/sqrt(sigma^2 + 1)  (EUP rsqrt, vectorized)
    sig_v = jnp.full((1, 1), sig, dtype=jnp.float32)
    c_in = jax.lax.rsqrt(sig_v * sig_v + 1.0)              # (1, 1)
    xs = x * c_in                                          # (C, HW)

    # 1x1-conv channel mix on the VPU: h[d, :] = sum_c wc[c, d] * xs[c, :]
    # (C = 4 broadcast-FMAs; avoids feeding the MXU a K=4 contraction)
    wct = wct_ref[...]                                     # (C, C)
    h = wct[:, 0:1] * xs[0:1, :]                           # (C,1)*(1,HW) -> (C,HW)
    for c in range(1, C):
        h = h + wct[:, c:c + 1] * xs[c:c + 1, :]

    # CFG combine: uncond + (cond - uncond) * cond_scale.  The image path h and
    # b*sigma are identical for both halves of the doubled batch (x, sigma are
    # duplicated and this synthetic inner model is linear), so only the
    # conditioning embeddings differ between the two branches.
    # TODO(synk): with the real (nonlinear) Stable Diffusion UNet inner model,
    # both branches must still be evaluated; only the final combine fuses here.
    ce_u = ceu_ref[0]                                      # (C, 1)
    ce_c = cec_ref[0]                                      # (C, 1)
    ce = ce_u + (ce_c - ce_u) * scale                      # (C, 1)

    o_ref[0] = h + b_ref[...] * sig + ce                   # broadcast -> (C, HW)


# ---------------------------------------------------------------------------
# Wrapper (glue: reshape + tiny hoisted conditioning projection in plain JAX)
# ---------------------------------------------------------------------------
def kcfg_denoiser(x, sigma, uncond, cond, cond_scale, params):
    B, C, H, W = x.shape
    HW = H * W

    # NCHW -> (B, C, HW): pure contiguous reshape, no transpose / extra HBM pass.
    x_flat = x.reshape(B, C, HW).astype(jnp.float32)
    sigma_arr = sigma.astype(jnp.float32)                  # (B,)
    scale_arr = jnp.full((1,), cond_scale, dtype=jnp.float32)

    # Hoisted conditioning pooling + projection (tiny (B,Hd)@(Hd,C) XLA ops);
    # the kernel just adds the resulting per-sample (C,1) embeddings.
    ce_u = (jnp.mean(uncond, axis=1) @ params["wcond"])[:, :, None]  # (B, C, 1)
    ce_c = (jnp.mean(cond, axis=1) @ params["wcond"])[:, :, None]    # (B, C, 1)

    wct = params["wc"].T                                   # (C, C), wct[d,c]=wc[c,d]
    b_col = params["b"].reshape(C, 1)                      # (C, 1)

    grid_spec = pltpu.PrefetchScalarGridSpec(
        num_scalar_prefetch=2,                             # sigma, cond_scale
        grid=(B,),
        in_specs=[
            pl.BlockSpec((1, C, HW), lambda i, sig, sc: (i, 0, 0)),   # x
            pl.BlockSpec((C, C), lambda i, sig, sc: (0, 0)),          # wc^T
            pl.BlockSpec((C, 1), lambda i, sig, sc: (0, 0)),          # bias
            pl.BlockSpec((1, C, 1), lambda i, sig, sc: (i, 0, 0)),    # ce_uncond
            pl.BlockSpec((1, C, 1), lambda i, sig, sc: (i, 0, 0)),    # ce_cond
        ],
        out_specs=pl.BlockSpec((1, C, HW), lambda i, sig, sc: (i, 0, 0)),
    )

    out = pl.pallas_call(
        _kcfg_fused_kernel,
        out_shape=jax.ShapeDtypeStruct((B, C, HW), jnp.float32),
        grid_spec=grid_spec,
        compiler_params=pltpu.CompilerParams(
            # No cross-step carry on the batch axis -> shardable across v7x's
            # 2 TensorCores; harmless on single-TC v5e/v6e.
            dimension_semantics=("parallel",),
        ),
    )(sigma_arr, scale_arr, x_flat, wct, b_col, ce_u, ce_c)

    # (B, C, HW) -> NCHW: pure reshape.
    return out.reshape(B, C, H, W)


# ---------------------------------------------------------------------------
# Pure-JAX reference: faithful to the original module (cat/chunk/combine)
# ---------------------------------------------------------------------------
def _reference(x, sigma, uncond, cond, cond_scale, params):
    B, C, H, W = x.shape
    x_in = jnp.concatenate([x, x], 0)
    sigma_in = jnp.concatenate([sigma, sigma], 0).astype(jnp.float32)
    cond_in = jnp.concatenate([uncond, cond], 0)
    x_cl = jnp.transpose(x_in, (0, 2, 3, 1)).reshape(2 * B, H * W, C)
    c_in = jax.lax.rsqrt(sigma_in * sigma_in + 1.0)[:, None, None]
    h = jnp.einsum("bpc,cd->bpd", x_cl * c_in, params["wc"])
    cond_pool = jnp.mean(cond_in, axis=1)                                 # (2B, Hd)
    cond_emb = cond_pool @ params["wcond"]                                # (2B, C)
    den = h + cond_emb[:, None, :] + params["b"][None] * sigma_in[:, None, None]
    u, c = den[:B], den[B:]
    out = u + (c - u) * cond_scale
    return jnp.transpose(out.reshape(B, H, W, C), (0, 3, 1, 2))


# ---------------------------------------------------------------------------
if __name__ == "__main__":
    B, C, H, W = 2, 4, 16, 16
    S, Hd = 8, 32

    key = jax.random.PRNGKey(0)
    kx, ks, ku, kc, kw1, kw2, kb = jax.random.split(key, 7)

    x = jax.random.normal(kx, (B, C, H, W), jnp.float32)
    sigma = jax.random.uniform(ks, (B,), jnp.float32, 0.5, 2.0)
    uncond = jax.random.normal(ku, (B, S, Hd), jnp.float32)
    cond = jax.random.normal(kc, (B, S, Hd), jnp.float32)
    cond_scale = 7.5

    # deterministic synthetic inner-model parameters
    params = {
        "wc": jax.random.normal(kw1, (C, C), jnp.float32) * 0.5,
        "wcond": jax.random.normal(kw2, (Hd, C), jnp.float32) * 0.1,
        "b": jax.random.normal(kb, (1, C), jnp.float32) * 0.1,
    }

    out = kcfg_denoiser(x, sigma, uncond, cond, cond_scale, params)
    jax.block_until_ready(out)

    ref = _reference(x, sigma, uncond, cond, cond_scale, params)
    assert out.shape == (B, C, H, W), out.shape
    assert jnp.allclose(out, ref, atol=1e-4, rtol=1e-4), "mismatch vs reference"

    # TODO(synk): the real Stable Diffusion UNet inner_model is an external
    # module; a small deterministic conditioned linear denoiser stands in here.
    print("KERNEL_OK")
</pallas_src>

<mosaic_0001>
module attributes {stable_mosaic.version = 11 : i64} {
  func.func @_kcfg_fused_kernel(%arg0: i32, %arg1: memref<2xf32, #tpu.memory_space<smem>>, %arg2: memref<1xf32, #tpu.memory_space<smem>>, %arg3: memref<1x4x256xf32, #tpu.memory_space<vmem>>, %arg4: memref<4x4xf32, #tpu.memory_space<vmem>>, %arg5: memref<4x1xf32, #tpu.memory_space<vmem>>, %arg6: memref<1x4x1xf32, #tpu.memory_space<vmem>>, %arg7: memref<1x4x1xf32, #tpu.memory_space<vmem>>, %arg8: memref<1x4x256xf32, #tpu.memory_space<vmem>>) attributes {dimension_semantics = [#tpu.dimension_semantics<parallel>], iteration_bounds = array<i64: 2>, scalar_prefetch = 2 : i64, scratch_operands = 0 : i64, tpu.core_type = #tpu.core_type<tc>, window_params = [{transform_indices = @transform_0, window_bounds = array<i64: 1, 4, 256>}, {pipeline_mode = #tpu.pipeline_mode<synchronous>, transform_indices = @transform_1, window_bounds = array<i64: 4, 4>}, {pipeline_mode = #tpu.pipeline_mode<synchronous>, transform_indices = @transform_2, window_bounds = array<i64: 4, 1>}, {transform_indices = @transform_3, window_bounds = array<i64: 1, 4, 1>}, {transform_indices = @transform_4, window_bounds = array<i64: 1, 4, 1>}, {transform_indices = @transform_5, window_bounds = array<i64: 1, 4, 256>}]} {
    %0 = arith.index_cast %arg0 : i32 to index
    %1 = memref.load %arg1[%0] : memref<2xf32, #tpu.memory_space<smem>>
    %c0 = arith.constant 0 : index
    %2 = memref.load %arg2[%c0] : memref<1xf32, #tpu.memory_space<smem>>
    %c0_0 = arith.constant 0 : index
    %c0_1 = arith.constant 0 : index
    %c0_2 = arith.constant 0 : index
    %3 = vector.load %arg3[%c0_0, %c0_1, %c0_2] : memref<1x4x256xf32, #tpu.memory_space<vmem>>, vector<1x4x256xf32>
    %4 = vector.shape_cast %3 : vector<1x4x256xf32> to vector<4x256xf32>
    %5 = vector.broadcast %1 : f32 to vector<1x1xf32>
    %6 = arith.mulf %5, %5 : vector<1x1xf32>
    %cst = arith.constant 1.000000e+00 : f32
    %7 = vector.broadcast %cst : f32 to vector<1x1xf32>
    %8 = arith.addf %6, %7 : vector<1x1xf32>
    %9 = math.rsqrt %8 : vector<1x1xf32>
    %10 = vector.broadcast %9 : vector<1x1xf32> to vector<4x256xf32>
    %11 = arith.mulf %4, %10 : vector<4x256xf32>
    %c0_3 = arith.constant 0 : index
    %c0_4 = arith.constant 0 : index
    %12 = vector.load %arg4[%c0_3, %c0_4] : memref<4x4xf32, #tpu.memory_space<vmem>>, vector<4x4xf32>
    %13 = vector.extract_strided_slice %12 {offsets = [0, 0], sizes = [4, 1], strides = [1, 1]} : vector<4x4xf32> to vector<4x1xf32>
    %14 = vector.extract_strided_slice %11 {offsets = [0, 0], sizes = [1, 256], strides = [1, 1]} : vector<4x256xf32> to vector<1x256xf32>
    %15 = vector.broadcast %13 : vector<4x1xf32> to vector<4x256xf32>
    %16 = vector.broadcast %14 : vector<1x256xf32> to vector<4x256xf32>
    %17 = arith.mulf %15, %16 : vector<4x256xf32>
    %18 = vector.extract_strided_slice %12 {offsets = [0, 1], sizes = [4, 1], strides = [1, 1]} : vector<4x4xf32> to vector<4x1xf32>
    %19 = vector.extract_strided_slice %11 {offsets = [1, 0], sizes = [1, 256], strides = [1, 1]} : vector<4x256xf32> to vector<1x256xf32>
    %20 = vector.broadcast %18 : vector<4x1xf32> to vector<4x256xf32>
    %21 = vector.broadcast %19 : vector<1x256xf32> to vector<4x256xf32>
    %22 = arith.mulf %20, %21 : vector<4x256xf32>
    %23 = arith.addf %17, %22 : vector<4x256xf32>
    %24 = vector.extract_strided_slice %12 {offsets = [0, 2], sizes = [4, 1], strides = [1, 1]} : vector<4x4xf32> to vector<4x1xf32>
    %25 = vector.extract_strided_slice %11 {offsets = [2, 0], sizes = [1, 256], strides = [1, 1]} : vector<4x256xf32> to vector<1x256xf32>
    %26 = vector.broadcast %24 : vector<4x1xf32> to vector<4x256xf32>
    %27 = vector.broadcast %25 : vector<1x256xf32> to vector<4x256xf32>
    %28 = arith.mulf %26, %27 : vector<4x256xf32>
    %29 = arith.addf %23, %28 : vector<4x256xf32>
    %30 = vector.extract_strided_slice %12 {offsets = [0, 3], sizes = [4, 1], strides = [1, 1]} : vector<4x4xf32> to vector<4x1xf32>
    %31 = vector.extract_strided_slice %11 {offsets = [3, 0], sizes = [1, 256], strides = [1, 1]} : vector<4x256xf32> to vector<1x256xf32>
    %32 = vector.broadcast %30 : vector<4x1xf32> to vector<4x256xf32>
    %33 = vector.broadcast %31 : vector<1x256xf32> to vector<4x256xf32>
    %34 = arith.mulf %32, %33 : vector<4x256xf32>
    %35 = arith.addf %29, %34 : vector<4x256xf32>
    %c0_5 = arith.constant 0 : index
    %c0_6 = arith.constant 0 : index
    %c0_7 = arith.constant 0 : index
    %36 = vector.load %arg6[%c0_5, %c0_6, %c0_7] : memref<1x4x1xf32, #tpu.memory_space<vmem>>, vector<1x4x1xf32>
    %37 = vector.shape_cast %36 : vector<1x4x1xf32> to vector<4x1xf32>
    %c0_8 = arith.constant 0 : index
    %c0_9 = arith.constant 0 : index
    %c0_10 = arith.constant 0 : index
    %38 = vector.load %arg7[%c0_8, %c0_9, %c0_10] : memref<1x4x1xf32, #tpu.memory_space<vmem>>, vector<1x4x1xf32>
    %39 = vector.shape_cast %38 : vector<1x4x1xf32> to vector<4x1xf32>
    %40 = arith.subf %39, %37 : vector<4x1xf32>
    %41 = vector.broadcast %2 : f32 to vector<4x1xf32>
    %42 = arith.mulf %40, %41 : vector<4x1xf32>
    %43 = arith.addf %37, %42 : vector<4x1xf32>
    %c0_11 = arith.constant 0 : index
    %c0_12 = arith.constant 0 : index
    %44 = vector.load %arg5[%c0_11, %c0_12] : memref<4x1xf32, #tpu.memory_space<vmem>>, vector<4x1xf32>
    %45 = vector.broadcast %1 : f32 to vector<4x1xf32>
    %46 = arith.mulf %44, %45 : vector<4x1xf32>
    %47 = vector.broadcast %46 : vector<4x1xf32> to vector<4x256xf32>
    %48 = arith.addf %35, %47 : vector<4x256xf32>
    %49 = vector.broadcast %43 : vector<4x1xf32> to vector<4x256xf32>
    %50 = arith.addf %48, %49 : vector<4x256xf32>
    %c0_13 = arith.constant 0 : index
    %c0_14 = arith.constant 0 : index
    %c0_15 = arith.constant 0 : index
    %51 = vector.load %arg8[%c0_13, %c0_14, %c0_15] : memref<1x4x256xf32, #tpu.memory_space<vmem>>, vector<1x4x256xf32>
    %52 = vector.shape_cast %51 : vector<1x4x256xf32> to vector<4x256xf32>
    %53 = vector.shape_cast %50 : vector<4x256xf32> to vector<1x4x256xf32>
    tpu.vector_store %arg8[%c0_13, %c0_14, %c0_15], %53 {strides = array<i32>} : memref<1x4x256xf32, #tpu.memory_space<vmem>>, vector<1x4x256xf32>,
    return
  }
  func.func @transform_0(%arg0: i32, %arg1: memref<2xf32, #tpu.memory_space<smem>>, %arg2: memref<1xf32, #tpu.memory_space<smem>>) -> (i32, i32, i32) {
    %c0_i32 = arith.constant 0 : i32
    %c0_i32_0 = arith.constant 0 : i32
    %c0_i32_1 = arith.constant 0 : i32
    return %arg0, %c0_i32, %c0_i32_0 : i32, i32, i32
  }
  func.func @transform_1(%arg0: i32, %arg1: memref<2xf32, #tpu.memory_space<smem>>, %arg2: memref<1xf32, #tpu.memory_space<smem>>) -> (i32, i32) {
    %c0_i32 = arith.constant 0 : i32
    %c0_i32_0 = arith.constant 0 : i32
    %c0_i32_1 = arith.constant 0 : i32
    return %c0_i32, %c0_i32_0 : i32, i32
  }
  func.func @transform_2(%arg0: i32, %arg1: memref<2xf32, #tpu.memory_space<smem>>, %arg2: memref<1xf32, #tpu.memory_space<smem>>) -> (i32, i32) {
    %c0_i32 = arith.constant 0 : i32
    %c0_i32_0 = arith.constant 0 : i32
    %c0_i32_1 = arith.constant 0 : i32
    return %c0_i32, %c0_i32_0 : i32, i32
  }
  func.func @transform_3(%arg0: i32, %arg1: memref<2xf32, #tpu.memory_space<smem>>, %arg2: memref<1xf32, #tpu.memory_space<smem>>) -> (i32, i32, i32) {
    %c0_i32 = arith.constant 0 : i32
    %c0_i32_0 = arith.constant 0 : i32
    %c0_i32_1 = arith.constant 0 : i32
    return %arg0, %c0_i32, %c0_i32_0 : i32, i32, i32
  }
  func.func @transform_4(%arg0: i32, %arg1: memref<2xf32, #tpu.memory_space<smem>>, %arg2: memref<1xf32, #tpu.memory_space<smem>>) -> (i32, i32, i32) {
    %c0_i32 = arith.constant 0 : i32
    %c0_i32_0 = arith.constant 0 : i32
    %c0_i32_1 = arith.constant 0 : i32
    return %arg0, %c0_i32, %c0_i32_0 : i32, i32, i32
  }
  func.func @transform_5(%arg0: i32, %arg1: memref<2xf32, #tpu.memory_space<smem>>, %arg2: memref<1xf32, #tpu.memory_space<smem>>) -> (i32, i32, i32) {
    %c0_i32 = arith.constant 0 : i32
    %c0_i32_0 = arith.constant 0 : i32
    %c0_i32_1 = arith.constant 0 : i32
    return %arg0, %c0_i32, %c0_i32_0 : i32, i32, i32
  }
}

</mosaic_0001>

<bundles_post_ra>
// kernel: tpu_custom_call.1
= control target key start
LH: loop header
LB: loop body
LE: loop exit
PB: predicated region body
PF: predicated region fallthrough
CT: control target
= control target key end

     0   :  { %s815_s0 = inlined_call_operand.vmem [shape: f32[2], index: 0, kind: input, shape index: {}]   ;;  %s816_s1 = inlined_call_operand.<no memory space> [shape: f32[1], index: 1, kind: input, shape index: {}]   ;;  %s817_s2 = inlined_call_operand.vmem [shape: f32[2,4,256], index: 2, kind: input, shape index: {}]   ;;  %s818_s3 = inlined_call_operand.vmem [shape: f32[4,4], index: 3, kind: input, shape index: {}]   ;;  %s819_s4 = inlined_call_operand.vmem [shape: f32[4,1], index: 4, kind: input, shape index: {}]   ;;  %s820_s5 = inlined_call_operand.vmem [shape: f32[2,4,1], index: 5, kind: input, shape index: {}]   ;;  %s821_s6 = inlined_call_operand.vmem [shape: f32[2,4,1], index: 6, kind: input, shape index: {}]   ;;  %s822_s7 = inlined_call_operand.hbm [shape: f32[2,4,256], index: 7, kind: output, shape index: {}]  }
   0x1   :  { %s12_s26 = sshll.u32 %s815_s0, 4  ;;  %16 = sst [smem:[#allocation4]] %s816_s1  ;;  %s13_s26 = int_to_ptr.vmem [resolvable:$true] %s12_s26 }
   0x2   :  { %s572_s29 = scalar_lea.vmem %s13_s26, 16  ;;  %p577_p1 = scmp.lt.s32.totalorder %s13_s26, %s13_s26 }
   0x3   :  { %p573_p0 = scmp.ne.s32.totalorder %s13_s26, %s572_s29  ;;  %p578_p2 = scmp.lt.s32.totalorder %s572_s29, %s572_s29 }
   0x5   :  { %p579_p3 = por %p578_p2, %p577_p1 }
   0x7   :  { %p580_p4 = pnand %p579_p3, %p573_p0 }
   0x9   :  { %583 = shalt.err (!%p580_p4)  }
   0xa   :  { %s650_s30 = smov [#allocation3]  }
   0xb   :  { %15 = dma.vmem_to_smem %s13_s26, 16, %s650_s30, [#allocation2] }
   0xc   :  { %628 = dma.done.wait [#allocation2], 16 }
   0xd   :  { %629 = vsyncadd [#allocation2], 4294967280 }
   0xe   :  { %18 = sfence }
   0xf   :  { %19 = vsyncpa [#allocation6], 0 }
  0x10   :  { %21 = vsyncpa [#allocation6 + $0x1], 0  ;;  %s702_s0 = smov 0   ;;  %s704_s8 = smov 0  }
  0x11   :  { %s706_s1 = smov 0   ;;  %s708_s9 = smov 0  }
  0x12 LB: > { %s723_s10 = sadd.s32 4294967295, %s648_s9   ;;  %s504_s11 = sadd.s32 4294967294, %s648_s9   ;;  %s648_s9 = sphi %s708_s9, %s828_s9   ;;  %s644_s1 = sphi %s706_s1, %s827_s1   ;;  %s640_s8 = sphi %s704_s8, %s826_s8   ;;  %s636_s0 = sphi %s702_s0, %s825_s0  }
  0x13   : > { %s727_s12 = sadd.s32 1, %s648_s9   ;;  %s154_s13 = sadd.s32 1, %s644_s1 }
  0x14   : > { %s151_s14 = ssub.s32 %s648_s9, %s727_s12  ;;  %p164_p5 = scmp.ne.s32.totalorder %s644_s1, %s640_s8 }
  0x15   : > { %p152_p6 = scmp.eq.s32.totalorder %s151_s14, 0  ;;  %p165_p7 = scmp.eq.s32.totalorder %s723_s10, 1 }
  0x16   : > { %p170_p8 = scmp.ne.s32.totalorder %s640_s8, %s636_s0  ;;  %p171_p9 = scmp.eq.s32.totalorder %s504_s11, 1 }
  0x17   : > { %s738_s15 = scalar_select %p152_p6, %s644_s1, %s154_s13  }
  0x18   : > { %p740_p10 = por %p165_p7, %p164_p5  ;;  %p744_p11 = por %p171_p9, %p170_p8 }
  0x19   : > { %p507_p12 = scmp.ge.s32.totalorder %s648_s9, 1  ;;  %p217_p13 = scmp.lt.s32.totalorder %s648_s9, 3 }
  0x1b   : > { %p218_p0 = pnand %p507_p12, %p217_p13 }
  0x1c   : > { %v274_v0 = vld [vmem:[%s818_s3] sm:$0xf] (!%p218_p0)  ;;  %v651_v1 = vmov (!%p218_p0), 0   ;;  %v652_v2 = vmov (!%p218_p0), 2   ;;  %s266_s20 = sld [smem:[#allocation3 + %s723_s10]] (!%p218_p0)  ;;  %p253_p1 = scmp.lt.s32.totalorder (!%p218_p0), %s723_s10, 1  ;;  %v281_v19 = vlaneseq (!%p218_p0) }
  0x1d   : > { %221 = sbr.rel (%p218_p0) target bundleno = 194 (0xc2), region = 40  ;;  %564 = vset.pattern.permute.xlu0 (!%p218_p0), %v651_v1  ;;  %566 = vset.pattern.permute.xlu1 (!%p218_p0), %v652_v2  ;;  %s267_s21 = sld [smem:[#allocation4]] (!%p218_p0)  ;;  %v385_v3 = vld [vmem:[%s819_s4] sm:$0xf] (!%p218_p0)  ;;  %v653_v4 = vmov (!%p218_p0), 1   ;;  %v654_v5 = vmov (!%p218_p0), 3  }
  0x1e   : > { %277 = vperm.xlu0 (!%p218_p0), %564, %v274_v0   ;;  %328 = vperm.xlu1 (!%p218_p0), %566, %v274_v0   ;;  %v282_v20 = vshrl.u32 (!%p218_p0), %v281_v19, 7 }
  0x20   : > { %v283_v21 = vsub.s32 (!%p218_p0), 0, %v282_v20  ;;  %v287_v22 = vsub.s32 (!%p218_p0), 4, %v282_v20  ;;  %v307_v23 = vsub.s32 (!%p218_p0), 1, %v282_v20  ;;  %v311_v24 = vsub.s32 (!%p218_p0), 5, %v282_v20 }
  0x21   : > { %v333_v25 = vsub.s32 (!%p218_p0), 2, %v282_v20  ;;  %v337_v26 = vsub.s32 (!%p218_p0), 6, %v282_v20  ;;  %v359_v27 = vsub.s32 (!%p218_p0), 3, %v282_v20  ;;  %v363_v28 = vsub.s32 (!%p218_p0), 7, %v282_v20 }
  0x22   : > { %565 = vset.pattern.permute.xlu0 (!%p218_p0), %v653_v4  ;;  %567 = vset.pattern.permute.xlu1 (!%p218_p0), %v654_v5  ;;  %v269_v6 = vstv (!%p218_p0), %s266_s20  ;;  %s250_s20 = sand.u32 (!%p218_p0), 1, %s640_s8  }
  0x23   : > { %302 = vperm.xlu0 (!%p218_p0), %565, %v274_v0   ;;  %354 = vperm.xlu1 (!%p218_p0), %567, %v274_v0   ;;  %v386_v9 = vmul.f32 (!%p218_p0), %v385_v3, %v269_v6  ;;  %v270_v10 = vmul.f32 (!%p218_p0), %v269_v6, %v269_v6  ;;  %v382_v12 = vstv (!%p218_p0), %s267_s21  ;;  %s508_s21 = sshll.u32 (!%p218_p0), %s250_s20, 3 }
  0x24   : > { %s254_s22 = scalar_select %p253_p1, %s723_s10, 1 }
  0x25   : > { %v271_v13 = vadd.f32 1.0, %v270_v10  ;;  %s252_s23 = scalar_lea.vmem [#allocation5], %s508_s21 }
  0x26   : > { %s511_s25 = sshll.u32 %s254_s22, 2  ;;  %s518_s13 = sshll.u32 %s254_s22, 3 }
  0x27   : > { %s261_s28 = scalar_lea.vmem %s820_s5, %s511_s25  ;;  %s265_s11 = scalar_lea.vmem %s821_s6, %s511_s25  ;;  %568 = vset.pattern.permute.xlu1 %v651_v1  ;;  %569 = vset.pattern.permute.xlu0 %v651_v1  ;;  %570 = vrsqrt.f32 %v271_v13 }
  0x28   : > { %v379_v7 = vld [vmem:[%s261_s28] sm:$0xf]  ;;  %389 = vperm.xlu1 %568, %v386_v9   ;;  %s257_s19 = scalar_lea.vmem %s817_s2, %s518_s13  ;;  %s519_s22 = sshll.u32 %s723_s10, 7 }
  0x29   : > { %v380_v8 = vld [vmem:[%s265_s11] sm:$0xf]  ;;  %s421_s24 = sshll.u32 %s252_s23, 4  ;;  %s773_s27 = scalar_lea.hbm %s822_s7, %s519_s22  ;;  %s775_s24 = int_to_ptr.vmem [resolvable:$true] %s421_s24 }
  0x2a   : > { %v381_v11 = vsub.f32 %v380_v8, %v379_v7  ;;  %v268_v16 = vld [vmem:[%s257_s19] sm:$0xff]  ;;  %s407_s28 = scalar_lea.sflag [#allocation6], %s250_s20  ;;  %s584_s29 = scalar_lea.vmem %s775_s24, 128 }
  0x2b   : > { %p585_p2 = scmp.ne.s32.totalorder %s775_s24, %s584_s29  ;;  %s655_s10 = smov [#allocation5]  }
  0x2c   : > { %v383_v14 = vmul.f32 %v382_v12, %v381_v11  ;;  %s588_s30 = sshll.u32 %s655_s10, 4  ;;  %s589_s30 = int_to_ptr.vmem [resolvable:$false] %s588_s30 }
  0x2d   : > { %p586_p3 = pnand %p585_p2, %p740_p10  ;;  %s590_s11 = scalar_lea.vmem %s589_s30, 256 }
  0x2e   : > { %v384_v15 = vadd.f32 %v383_v14, %v379_v7  ;;  %p591_p5 = scmp.lt.s32.totalorder %s775_s24, %s589_s30  ;;  %p592_p6 = scmp.lt.s32.totalorder %s590_s11, %s584_s29 }
  0x2f   : > { %p587_p4 = pneg %p586_p3 }
  0x30   : > { %396 = vperm.xlu0 %569, %v384_v15   ;;  %p593_p7 = por %p592_p6, %p591_p5 }
  0x31   : > { %v571_v17 = vpop.eup %570 }
  0x32   : > { %v273_v18 = vmul.f32 %v571_v17, %v268_v16  ;;  %p594_p8 = pnand %p593_p7, %p587_p4 }
  0x34   : > { %v284_v29 = vrot.slane %v273_v18, %v283_v21  ;;  %v288_v30 = vrot.slane %v273_v18, %v287_v22  ;;  %v308_v31 = vrot.slane %v273_v18, %v307_v23  ;;  %v312_v32 = vrot.slane %v273_v18, %v311_v24 }
  0x35   : > { %v334_v33 = vrot.slane %v273_v18, %v333_v25  ;;  %v338_v34 = vrot.slane %v273_v18, %v337_v26  ;;  %v360_v37 = vrot.slane %v273_v18, %v359_v27  ;;  %v364_v38 = vrot.slane %v273_v18, %v363_v28 }
  0x36   : > { %v294_v39 = vrot.slane %v284_v29, %v283_v21  ;;  %v298_v40 = vrot.slane %v288_v30, %v283_v21  ;;  %v318_v41 = vrot.slane %v308_v31, %v307_v23  ;;  %v322_v42 = vrot.slane %v312_v32, %v307_v23 }
  0x37   : > { %v344_v43 = vrot.slane %v334_v33, %v333_v25  ;;  %v348_v44 = vrot.slane %v338_v34, %v333_v25  ;;  %v370_v45 = vrot.slane %v360_v37, %v359_v27  ;;  %v374_v46 = vrot.slane %v364_v38, %v359_v27 }
  0x9d   : > { %v278_v35 = vpop.permute.xlu0 %277  ;;  %v329_v36 = vpop.permute.xlu1 %328 }
  0x9e   : > { %v299_v49 = vmul.f32 %v294_v39, %v278_v35  ;;  %v300_v50 = vmul.f32 %v298_v40, %v278_v35  ;;  %v349_v53 = vmul.f32 %v344_v43, %v329_v36  ;;  %v350_v54 = vmul.f32 %v348_v44, %v329_v36 }
  0xa2   : > { %v303_v47 = vpop.permute.xlu0 %302  ;;  %v355_v48 = vpop.permute.xlu1 %354 }
  0xa3   : > { %v323_v51 = vmul.f32 %v318_v41, %v303_v47  ;;  %v324_v52 = vmul.f32 %v322_v42, %v303_v47  ;;  %v375_v57 = vmul.f32 %v370_v45, %v355_v48  ;;  %v376_v58 = vmul.f32 %v374_v46, %v355_v48 }
  0xa5   : > { %v325_v55 = vadd.f32 %v323_v51, %v299_v49  ;;  %v326_v56 = vadd.f32 %v324_v52, %v300_v50 }
  0xa7   : > { %v351_v59 = vadd.f32 %v349_v53, %v325_v55  ;;  %v352_v60 = vadd.f32 %v350_v54, %v326_v56  ;;  %v390_v61 = vpop.permute.xlu1 %389 }
  0xa9   : > { %v377_v62 = vadd.f32 %v375_v57, %v351_v59  ;;  %v378_v63 = vadd.f32 %v376_v58, %v352_v60 }
  0xab   : > { %v392_v1 = vadd.f32 %v390_v61, %v377_v62  ;;  %v393_v2 = vadd.f32 %v390_v61, %v378_v63 }
  0xaf   : > { %v397_v0 = vpop.permute.xlu0 %396 }
  0xb0   : > { %v399_v3 = vadd.f32 %v397_v0, %v392_v1  ;;  %v400_v4 = vadd.f32 %v397_v0, %v393_v2 }
  0xb2   : > { %v403_v5 = vcombine.low %v399_v3, %v400_v4 }
  0xb4   : > { %405 = vst [vmem:[%s252_s23] sm:$0xff] %v403_v5 }
  0xb5   : > { %597 = shalt.err (!%p594_p8)
}
  0xb6   : > { %s598_s13 = scalar_lea.hbm %s773_s27, 128  ;;  %s602_s19 = scalar_lea.hbm %s822_s7, 256 }
  0xb7   : > { %p599_p9 = scmp.ne.s32.totalorder %s773_s27, %s598_s13  ;;  %p603_p0 = scmp.lt.u32.totalorder %s773_s27, %s822_s7 }
  0xb8   : > { %p604_p1 = scmp.lt.u32.totalorder %s602_s19, %s598_s13  ;;  %p606_p3 = scmp.lt.u32.totalorder %s598_s13, %s773_s27 }
  0xb9   : > { %p600_p12 = pnand %p599_p9, %p740_p10 }
  0xba   : > { %p605_p2 = por %p604_p1, %p603_p0 }
  0xbb   : > { %p601_p13 = pneg %p600_p12 }
  0xbc   : > { %p607_p4 = por %p606_p3, %p605_p2 }
  0xbe   : > { %p608_p5 = pnand %p607_p4, %p601_p13 }
  0xc0   : > { %611 = shalt.err (!%p608_p5)
}
  0xc1   : > { %520 = dma.vmem_to_hbm [thread:$0]  (%p740_p10), %s775_s24, 128, %s773_s27, %s407_s28  }
  0xc2 PF: > { %p526_p6 = scmp.ge.s32.totalorder %s648_s9, 2  ;;  %s433_s22 = sand.u32 1, %s636_s0  }
  0xc3   : > { %s434_s23 = scalar_lea.sflag [#allocation6], %s433_s22 }
  0xc4   : > { %p523_p7 = pnand %p526_p6, %p744_p11 }
  0xc6   : > { %631 = dma.done.wait (!%p523_p7), %s434_s23, 128  }
  0xc7   : > { %633 = vsyncadd (!%p523_p7), %s434_s23, 4294967168  ;;  %p24_p8 = scmp.ge.s32.totalorder %s727_s12, 4   ;;  %s825_s0 = smov %s640_s8 }
  0xc8   : > { %s826_s8 = smov %s644_s1  ;;  %s827_s1 = smov %s738_s15 }
  0xc9   : > { %s828_s9 = smov %s727_s12  ;;  %26 = sbr.rel (!%p24_p8) target bundleno = 18 (0x12), region = 81 }
  0xd0   :  { %439 = vsyncpa [#allocation6], 1 }
  0xd1   :  { %441 = vsyncpa [#allocation6 + $0x1], 1 }

</bundles_post_ra>
